<compile_context>
chip_gen: v7x
topology: tpu7x:2x2x1
jax: 0.10.0
libtpu: 0.0.40
codegen_flags: <defaults>
</compile_context>

<pallas_src>
import jax
import jax.numpy as jnp
from jax.experimental import pallas as pl
from jax.experimental.pallas import tpu as pltpu

LN_EPS = 1e-12


def _round_up(x, m):
    return ((x + m - 1) // m) * m


def _tpu_vmem_capacity_bytes():
    try:
        return pltpu.get_tpu_info().vmem_capacity_bytes
    except Exception:
        return 64 * 1024 * 1024  # conservative default (v7x per-TC VMEM)


def _default_block_rows():
    # v5e/v6e (128 MiB VMEM) afford larger row tiles; v7x (64 MiB/TC) stays at 256.
    return 256 if _tpu_vmem_capacity_bytes() <= 64 * 1024 * 1024 else 512


def _vmem_limit_bytes():
    cap = _tpu_vmem_capacity_bytes()
    if cap <= 64 * 1024 * 1024:      # v7x: leave headroom under 64 MiB/TC
        return 40 * 1024 * 1024
    return 64 * 1024 * 1024          # v5e / v6e: 128 MiB physical


def _make_kernel(hid, hid_pad):
    """Fused dense + bias + residual + LayerNorm over one (TM, ·) row tile."""
    inv_hid = 1.0 / hid
    needs_mask = hid_pad != hid

    def kernel(x_ref, r_ref, w_ref, b_ref, g_ref, beta_ref, o_ref):
        # dense: (TM, I) @ (I, Hp) -> f32 accumulation on the MXU
        # (bf16-native when x / W are bf16).
        h = jnp.dot(x_ref[...], w_ref[...], preferred_element_type=jnp.float32)
        h = h + b_ref[...].astype(jnp.float32)          # (1, Hp) broadcast

        # dropout: identity at inference.

        # residual add
        h = h + r_ref[...].astype(jnp.float32)

        # LayerNorm over the *true* hidden width. Padded lanes of h are exactly
        # zero (zero W columns / bias / residual), so an unmasked sum / hid is
        # the correct mean; the variance masks padded lanes out of diff.
        mu = jnp.sum(h, axis=-1, keepdims=True) * inv_hid
        diff = h - mu
        if needs_mask:
            lane = jax.lax.broadcasted_iota(jnp.int32, diff.shape, 1)
            diff = jnp.where(lane < hid, diff, 0.0)
        var = jnp.sum(diff * diff, axis=-1, keepdims=True) * inv_hid
        hn = diff * jax.lax.rsqrt(var + LN_EPS)
        hn = hn * g_ref[...].astype(jnp.float32) + beta_ref[...].astype(jnp.float32)

        o_ref[...] = hn.astype(o_ref.dtype)

    return kernel


def bert_output(hidden_states, input_tensor, params, *, block_rows=None,
                out_dtype=None):
    """BertOutput forward.

    hidden_states: (batch, seq, intermediate) — ideally bf16 (MXU-native path).
    input_tensor : (batch, seq, hidden) residual — ideally bf16.
    params["w"]  : (intermediate, hidden) — ideally pre-cast to bf16 once.
    """
    b, s, inter = hidden_states.shape
    hid = input_tensor.shape[-1]
    n = b * s
    if out_dtype is None:
        out_dtype = input_tensor.dtype

    w, bias, gamma, beta = params["w"], params["b"], params["gamma"], params["beta"]

    x2d = hidden_states.reshape(n, inter)
    r2d = input_tensor.reshape(n, hid)

    # Keep the output lane axis dense (multiple of 128). Real BERT hidden sizes
    # (768 / 1024) already are, so this whole branch is a no-op in production.
    # Padded W columns / bias / gamma / beta / residual are zero, so padded
    # lanes of h are exact zeros inside the kernel.
    hid_pad = _round_up(hid, 128)
    if hid_pad != hid:
        pad = ((0, 0), (0, hid_pad - hid))
        w = jnp.pad(w, pad)
        bias = jnp.pad(bias, pad)
        gamma = jnp.pad(gamma, pad)
        beta = jnp.pad(beta, pad)
        r2d = jnp.pad(r2d, pad)

    if block_rows is None:
        block_rows = _default_block_rows()

    # Token-axis tile. No wrapper-side padding of N: Pallas masks the partial
    # last block (its garbage rows stay row-local and are never written back).
    tm = min(block_rows, _round_up(n, 8))
    if n >= 16 and pl.cdiv(n, tm) < 2:
        # v7x has 2 TensorCores per chip: make sure both get at least one step.
        tm = _round_up(pl.cdiv(n, 2), 8)
    grid = (pl.cdiv(n, tm),)

    kernel = _make_kernel(hid, hid_pad)

    # Advisory cost estimate with the actual (possibly bf16) byte counts.
    cost = pl.CostEstimate(
        flops=2 * n * inter * hid_pad + 10 * n * hid_pad,
        transcendentals=n,  # one rsqrt per row
        bytes_accessed=(x2d.size * x2d.dtype.itemsize
                        + r2d.size * r2d.dtype.itemsize
                        + w.size * w.dtype.itemsize
                        + (bias.size + gamma.size + beta.size) * bias.dtype.itemsize
                        + n * hid_pad * jnp.dtype(out_dtype).itemsize),
    )

    compiler_params = pltpu.CompilerParams(
        dimension_semantics=("parallel",),        # row tiles independent
        vmem_limit_bytes=_vmem_limit_bytes(),     # generation-aware
    )

    def call(param_spec_kwargs):
        in_specs = [
            pl.BlockSpec((tm, inter), lambda i: (i, 0)),       # x tile (double-buffered)
            pl.BlockSpec((tm, hid_pad), lambda i: (i, 0)),     # residual tile
            pl.BlockSpec((inter, hid_pad), lambda i: (0, 0), **param_spec_kwargs),  # W
            pl.BlockSpec((1, hid_pad), lambda i: (0, 0), **param_spec_kwargs),      # bias
            pl.BlockSpec((1, hid_pad), lambda i: (0, 0), **param_spec_kwargs),      # gamma
            pl.BlockSpec((1, hid_pad), lambda i: (0, 0), **param_spec_kwargs),      # beta
        ]
        return pl.pallas_call(
            kernel,
            out_shape=jax.ShapeDtypeStruct((n, hid_pad), out_dtype),
            grid=grid,
            in_specs=in_specs,
            out_specs=pl.BlockSpec((tm, hid_pad), lambda i: (i, 0)),
            compiler_params=compiler_params,
            cost_estimate=cost,
        )(x2d, r2d, w, bias, gamma, beta)

    try:
        # Grid-invariant params: single-buffer them (index_map is constant, so
        # they are never re-fetched; this reclaims a full extra W copy in VMEM).
        out2d = call({"pipeline_mode": pl.Buffered(1)})
    except Exception:
        # Fallback for jax versions without pipeline_mode / Buffered(1) support.
        out2d = call({})

    if hid_pad != hid:
        out2d = out2d[:, :hid]
    return out2d.reshape(b, s, hid)


def make_params(key, intermediate, hidden, *, matmul_dtype=jnp.bfloat16):
    """Deterministic synthetic parameters (same shapes as the nn.Module).

    W is pre-cast to the MXU-native matmul dtype once (outside the per-call
    path); bias / LayerNorm params stay f32 since post-matmul math is f32.
    """
    k1, k2 = jax.random.split(key)
    scale = 0.02
    w = scale * jax.random.normal(k1, (intermediate, hidden), jnp.float32)
    return {
        # dense: Linear(intermediate, hidden); stored as (in, out)
        "w": w.astype(matmul_dtype),
        "b": scale * jax.random.normal(k2, (1, hidden), jnp.float32),
        # LayerNorm(hidden, eps=1e-12)
        "gamma": jnp.ones((1, hidden), jnp.float32),
        "beta": jnp.zeros((1, hidden), jnp.float32),
    }


def reference(hidden_states, input_tensor, params):
    """Pure-JAX f32 reference (dropout in eval mode)."""
    h = hidden_states @ params["w"] + params["b"][0]
    h = h + input_tensor
    mu = h.mean(-1, keepdims=True)
    var = ((h - mu) ** 2).mean(-1, keepdims=True)
    h = (h - mu) / jnp.sqrt(var + LN_EPS)
    return h * params["gamma"][0] + params["beta"][0]


if __name__ == "__main__":
    batch, seq, hidden = 2, 8, 32
    intermediate = 4 * hidden  # 128

    key = jax.random.PRNGKey(0)
    k_x, k_r, k_p = jax.random.split(key, 3)

    # bf16 end-to-end activations (what the upstream GELU would emit); the
    # kernel accumulates the matmul in f32 and does all post-matmul math in f32.
    hidden_states = jax.random.normal(
        k_x, (batch, seq, intermediate), jnp.float32).astype(jnp.bfloat16)
    input_tensor = jax.random.normal(
        k_r, (batch, seq, hidden), jnp.float32).astype(jnp.bfloat16)
    params = make_params(k_p, intermediate, hidden)

    out = bert_output(hidden_states, input_tensor, params)
    out = jax.block_until_ready(out)

    ref = reference(
        hidden_states.astype(jnp.float32),
        input_tensor.astype(jnp.float32),
        {k: v.astype(jnp.float32) for k, v in params.items()},
    )
    assert out.shape == (batch, seq, hidden)
    assert out.dtype == input_tensor.dtype
    max_err = float(jnp.max(jnp.abs(out.astype(jnp.float32) - ref)))
    assert max_err < 5e-2, f"max abs error {max_err}"

    print("KERNEL_OK")
</pallas_src>

<mosaic_0001>
module attributes {stable_mosaic.version = 11 : i64} {
  func.func @kernel(%arg0: i32, %arg1: memref<8x128xbf16, #tpu.memory_space<vmem>>, %arg2: memref<8x128xbf16, #tpu.memory_space<vmem>>, %arg3: memref<128x128xbf16, #tpu.memory_space<vmem>>, %arg4: memref<1x128xf32, #tpu.memory_space<vmem>>, %arg5: memref<1x128xf32, #tpu.memory_space<vmem>>, %arg6: memref<1x128xf32, #tpu.memory_space<vmem>>, %arg7: memref<8x128xbf16, #tpu.memory_space<vmem>>) attributes {dimension_semantics = [#tpu.dimension_semantics<parallel>], iteration_bounds = array<i64: 2>, scalar_prefetch = 0 : i64, scratch_operands = 0 : i64, tpu.core_type = #tpu.core_type<tc>, window_params = [{transform_indices = @transform_0, window_bounds = array<i64: 8, 128>}, {transform_indices = @transform_1, window_bounds = array<i64: 8, 128>}, {pipeline_mode = #tpu.pipeline_mode<synchronous>, transform_indices = @transform_2, window_bounds = array<i64: 128, 128>}, {pipeline_mode = #tpu.pipeline_mode<synchronous>, transform_indices = @transform_3, window_bounds = array<i64: 1, 128>}, {pipeline_mode = #tpu.pipeline_mode<synchronous>, transform_indices = @transform_4, window_bounds = array<i64: 1, 128>}, {pipeline_mode = #tpu.pipeline_mode<synchronous>, transform_indices = @transform_5, window_bounds = array<i64: 1, 128>}, {transform_indices = @transform_6, window_bounds = array<i64: 8, 128>}]} {
    %c0 = arith.constant 0 : index
    %c0_0 = arith.constant 0 : index
    %0 = vector.load %arg1[%c0, %c0_0] : memref<8x128xbf16, #tpu.memory_space<vmem>>, vector<8x128xbf16>
    %c0_1 = arith.constant 0 : index
    %c0_2 = arith.constant 0 : index
    %1 = vector.load %arg3[%c0_1, %c0_2] : memref<128x128xbf16, #tpu.memory_space<vmem>>, vector<128x128xbf16>
    %cst = arith.constant dense<0.000000e+00> : vector<8x128xf32>
    %2 = tpu.matmul %0, %1, %cst {dimension_numbers = #tpu.dot_dimension_numbers<[1], [0], [0], [1], [0, 0, 1, 1], [], []>} : vector<8x128xbf16>, vector<128x128xbf16>, vector<8x128xf32> -> vector<8x128xf32>
    %c0_3 = arith.constant 0 : index
    %c0_4 = arith.constant 0 : index
    %3 = vector.load %arg4[%c0_3, %c0_4] : memref<1x128xf32, #tpu.memory_space<vmem>>, vector<1x128xf32>
    %4 = vector.broadcast %3 : vector<1x128xf32> to vector<8x128xf32>
    %5 = arith.addf %2, %4 : vector<8x128xf32>
    %c0_5 = arith.constant 0 : index
    %c0_6 = arith.constant 0 : index
    %6 = vector.load %arg2[%c0_5, %c0_6] : memref<8x128xbf16, #tpu.memory_space<vmem>>, vector<8x128xbf16>
    %7 = arith.extf %6 : vector<8x128xbf16> to vector<8x128xf32>
    %8 = arith.addf %5, %7 : vector<8x128xf32>
    %cst_7 = arith.constant dense<0.000000e+00> : vector<8xf32>
    %9 = vector.multi_reduction <add>, %8, %cst_7 [1] : vector<8x128xf32> to vector<8xf32>
    %10 = vector.shape_cast %9 : vector<8xf32> to vector<8x1xf32>
    %cst_8 = arith.constant 3.125000e-02 : f32
    %11 = vector.broadcast %cst_8 : f32 to vector<8x1xf32>
    %12 = arith.mulf %10, %11 : vector<8x1xf32>
    %13 = vector.broadcast %12 : vector<8x1xf32> to vector<8x128xf32>
    %14 = arith.subf %8, %13 : vector<8x128xf32>
    %15 = tpu.iota {dimensions = array<i32: 1>} : vector<8x128xi32>
    %c32_i32 = arith.constant 32 : i32
    %16 = vector.broadcast %c32_i32 : i32 to vector<8x128xi32>
    %17 = arith.cmpi slt, %15, %16 : vector<8x128xi32>
    %cst_9 = arith.constant 0.000000e+00 : f32
    %18 = vector.broadcast %cst_9 : f32 to vector<8x128xf32>
    %19 = arith.select %17, %14, %18 : vector<8x128xi1>, vector<8x128xf32>
    %20 = arith.mulf %19, %19 : vector<8x128xf32>
    %cst_10 = arith.constant dense<0.000000e+00> : vector<8xf32>
    %21 = vector.multi_reduction <add>, %20, %cst_10 [1] : vector<8x128xf32> to vector<8xf32>
    %22 = vector.shape_cast %21 : vector<8xf32> to vector<8x1xf32>
    %cst_11 = arith.constant 3.125000e-02 : f32
    %23 = vector.broadcast %cst_11 : f32 to vector<8x1xf32>
    %24 = arith.mulf %22, %23 : vector<8x1xf32>
    %cst_12 = arith.constant 9.99999996E-13 : f32
    %25 = vector.broadcast %cst_12 : f32 to vector<8x1xf32>
    %26 = arith.addf %24, %25 : vector<8x1xf32>
    %27 = math.rsqrt %26 : vector<8x1xf32>
    %28 = vector.broadcast %27 : vector<8x1xf32> to vector<8x128xf32>
    %29 = arith.mulf %19, %28 : vector<8x128xf32>
    %c0_13 = arith.constant 0 : index
    %c0_14 = arith.constant 0 : index
    %30 = vector.load %arg5[%c0_13, %c0_14] : memref<1x128xf32, #tpu.memory_space<vmem>>, vector<1x128xf32>
    %31 = vector.broadcast %30 : vector<1x128xf32> to vector<8x128xf32>
    %32 = arith.mulf %29, %31 : vector<8x128xf32>
    %c0_15 = arith.constant 0 : index
    %c0_16 = arith.constant 0 : index
    %33 = vector.load %arg6[%c0_15, %c0_16] : memref<1x128xf32, #tpu.memory_space<vmem>>, vector<1x128xf32>
    %34 = vector.broadcast %33 : vector<1x128xf32> to vector<8x128xf32>
    %35 = arith.addf %32, %34 : vector<8x128xf32>
    %36 = arith.truncf %35 : vector<8x128xf32> to vector<8x128xbf16>
    %c0_17 = arith.constant 0 : index
    %c0_18 = arith.constant 0 : index
    %37 = vector.load %arg7[%c0_17, %c0_18] : memref<8x128xbf16, #tpu.memory_space<vmem>>, vector<8x128xbf16>
    tpu.vector_store %arg7[%c0_17, %c0_18], %36 {strides = array<i32>} : memref<8x128xbf16, #tpu.memory_space<vmem>>, vector<8x128xbf16>,
    return
  }
  func.func @transform_0(%arg0: i32) -> (i32, i32) {
    %c0_i32 = arith.constant 0 : i32
    %c0_i32_0 = arith.constant 0 : i32
    return %arg0, %c0_i32 : i32, i32
  }
  func.func @transform_1(%arg0: i32) -> (i32, i32) {
    %c0_i32 = arith.constant 0 : i32
    %c0_i32_0 = arith.constant 0 : i32
    return %arg0, %c0_i32 : i32, i32
  }
  func.func @transform_2(%arg0: i32) -> (i32, i32) {
    %c0_i32 = arith.constant 0 : i32
    %c0_i32_0 = arith.constant 0 : i32
    %c0_i32_1 = arith.constant 0 : i32
    return %c0_i32, %c0_i32_0 : i32, i32
  }
  func.func @transform_3(%arg0: i32) -> (i32, i32) {
    %c0_i32 = arith.constant 0 : i32
    %c0_i32_0 = arith.constant 0 : i32
    %c0_i32_1 = arith.constant 0 : i32
    return %c0_i32, %c0_i32_0 : i32, i32
  }
  func.func @transform_4(%arg0: i32) -> (i32, i32) {
    %c0_i32 = arith.constant 0 : i32
    %c0_i32_0 = arith.constant 0 : i32
    %c0_i32_1 = arith.constant 0 : i32
    return %c0_i32, %c0_i32_0 : i32, i32
  }
  func.func @transform_5(%arg0: i32) -> (i32, i32) {
    %c0_i32 = arith.constant 0 : i32
    %c0_i32_0 = arith.constant 0 : i32
    %c0_i32_1 = arith.constant 0 : i32
    return %c0_i32, %c0_i32_0 : i32, i32
  }
  func.func @transform_6(%arg0: i32) -> (i32, i32) {
    %c0_i32 = arith.constant 0 : i32
    %c0_i32_0 = arith.constant 0 : i32
    return %arg0, %c0_i32 : i32, i32
  }
}

module attributes {stable_mosaic.version = 11 : i64} {
  func.func @kernel(%arg0: i32, %arg1: memref<8x128xbf16, #tpu.memory_space<vmem>>, %arg2: memref<8x128xbf16, #tpu.memory_space<vmem>>, %arg3: memref<128x128xbf16, #tpu.memory_space<vmem>>, %arg4: memref<1x128xf32, #tpu.memory_space<vmem>>, %arg5: memref<1x128xf32, #tpu.memory_space<vmem>>, %arg6: memref<1x128xf32, #tpu.memory_space<vmem>>, %arg7: memref<8x128xbf16, #tpu.memory_space<vmem>>) attributes {dimension_semantics = [#tpu.dimension_semantics<parallel>], iteration_bounds = array<i64: 2>, scalar_prefetch = 0 : i64, scratch_operands = 0 : i64, tpu.core_type = #tpu.core_type<tc>, window_params = [{transform_indices = @transform_0, window_bounds = array<i64: 8, 128>}, {transform_indices = @transform_1, window_bounds = array<i64: 8, 128>}, {pipeline_mode = #tpu.pipeline_mode<synchronous>, transform_indices = @transform_2, window_bounds = array<i64: 128, 128>}, {pipeline_mode = #tpu.pipeline_mode<synchronous>, transform_indices = @transform_3, window_bounds = array<i64: 1, 128>}, {pipeline_mode = #tpu.pipeline_mode<synchronous>, transform_indices = @transform_4, window_bounds = array<i64: 1, 128>}, {pipeline_mode = #tpu.pipeline_mode<synchronous>, transform_indices = @transform_5, window_bounds = array<i64: 1, 128>}, {transform_indices = @transform_6, window_bounds = array<i64: 8, 128>}]} {
    %c0 = arith.constant 0 : index
    %c0_0 = arith.constant 0 : index
    %0 = vector.load %arg1[%c0, %c0_0] : memref<8x128xbf16, #tpu.memory_space<vmem>>, vector<8x128xbf16>
    %c0_1 = arith.constant 0 : index
    %c0_2 = arith.constant 0 : index
    %1 = vector.load %arg3[%c0_1, %c0_2] : memref<128x128xbf16, #tpu.memory_space<vmem>>, vector<128x128xbf16>
    %cst = arith.constant dense<0.000000e+00> : vector<8x128xf32>
    %2 = tpu.matmul %0, %1, %cst {dimension_numbers = #tpu.dot_dimension_numbers<[1], [0], [0], [1], [0, 0, 1, 1], [], []>} : vector<8x128xbf16>, vector<128x128xbf16>, vector<8x128xf32> -> vector<8x128xf32>
    %c0_3 = arith.constant 0 : index
    %c0_4 = arith.constant 0 : index
    %3 = vector.load %arg4[%c0_3, %c0_4] : memref<1x128xf32, #tpu.memory_space<vmem>>, vector<1x128xf32>
    %4 = vector.broadcast %3 : vector<1x128xf32> to vector<8x128xf32>
    %5 = arith.addf %2, %4 : vector<8x128xf32>
    %c0_5 = arith.constant 0 : index
    %c0_6 = arith.constant 0 : index
    %6 = vector.load %arg2[%c0_5, %c0_6] : memref<8x128xbf16, #tpu.memory_space<vmem>>, vector<8x128xbf16>
    %7 = arith.extf %6 : vector<8x128xbf16> to vector<8x128xf32>
    %8 = arith.addf %5, %7 : vector<8x128xf32>
    %cst_7 = arith.constant dense<0.000000e+00> : vector<8xf32>
    %9 = vector.multi_reduction <add>, %8, %cst_7 [1] : vector<8x128xf32> to vector<8xf32>
    %10 = vector.shape_cast %9 : vector<8xf32> to vector<8x1xf32>
    %cst_8 = arith.constant 3.125000e-02 : f32
    %11 = vector.broadcast %cst_8 : f32 to vector<8x1xf32>
    %12 = arith.mulf %10, %11 : vector<8x1xf32>
    %13 = vector.broadcast %12 : vector<8x1xf32> to vector<8x128xf32>
    %14 = arith.subf %8, %13 : vector<8x128xf32>
    %15 = tpu.iota {dimensions = array<i32: 1>} : vector<8x128xi32>
    %c32_i32 = arith.constant 32 : i32
    %16 = vector.broadcast %c32_i32 : i32 to vector<8x128xi32>
    %17 = arith.cmpi slt, %15, %16 : vector<8x128xi32>
    %cst_9 = arith.constant 0.000000e+00 : f32
    %18 = vector.broadcast %cst_9 : f32 to vector<8x128xf32>
    %19 = arith.select %17, %14, %18 : vector<8x128xi1>, vector<8x128xf32>
    %20 = arith.mulf %19, %19 : vector<8x128xf32>
    %cst_10 = arith.constant dense<0.000000e+00> : vector<8xf32>
    %21 = vector.multi_reduction <add>, %20, %cst_10 [1] : vector<8x128xf32> to vector<8xf32>
    %22 = vector.shape_cast %21 : vector<8xf32> to vector<8x1xf32>
    %cst_11 = arith.constant 3.125000e-02 : f32
    %23 = vector.broadcast %cst_11 : f32 to vector<8x1xf32>
    %24 = arith.mulf %22, %23 : vector<8x1xf32>
    %cst_12 = arith.constant 9.99999996E-13 : f32
    %25 = vector.broadcast %cst_12 : f32 to vector<8x1xf32>
    %26 = arith.addf %24, %25 : vector<8x1xf32>
    %27 = math.rsqrt %26 : vector<8x1xf32>
    %28 = vector.broadcast %27 : vector<8x1xf32> to vector<8x128xf32>
    %29 = arith.mulf %19, %28 : vector<8x128xf32>
    %c0_13 = arith.constant 0 : index
    %c0_14 = arith.constant 0 : index
    %30 = vector.load %arg5[%c0_13, %c0_14] : memref<1x128xf32, #tpu.memory_space<vmem>>, vector<1x128xf32>
    %31 = vector.broadcast %30 : vector<1x128xf32> to vector<8x128xf32>
    %32 = arith.mulf %29, %31 : vector<8x128xf32>
    %c0_15 = arith.constant 0 : index
    %c0_16 = arith.constant 0 : index
    %33 = vector.load %arg6[%c0_15, %c0_16] : memref<1x128xf32, #tpu.memory_space<vmem>>, vector<1x128xf32>
    %34 = vector.broadcast %33 : vector<1x128xf32> to vector<8x128xf32>
    %35 = arith.addf %32, %34 : vector<8x128xf32>
    %36 = arith.truncf %35 : vector<8x128xf32> to vector<8x128xbf16>
    %c0_17 = arith.constant 0 : index
    %c0_18 = arith.constant 0 : index
    %37 = vector.load %arg7[%c0_17, %c0_18] : memref<8x128xbf16, #tpu.memory_space<vmem>>, vector<8x128xbf16>
    tpu.vector_store %arg7[%c0_17, %c0_18], %36 {strides = array<i32>} : memref<8x128xbf16, #tpu.memory_space<vmem>>, vector<8x128xbf16>,
    return
  }
  func.func @transform_0(%arg0: i32) -> (i32, i32) {
    %c0_i32 = arith.constant 0 : i32
    %c0_i32_0 = arith.constant 0 : i32
    return %arg0, %c0_i32 : i32, i32
  }
  func.func @transform_1(%arg0: i32) -> (i32, i32) {
    %c0_i32 = arith.constant 0 : i32
    %c0_i32_0 = arith.constant 0 : i32
    return %arg0, %c0_i32 : i32, i32
  }
  func.func @transform_2(%arg0: i32) -> (i32, i32) {
    %c0_i32 = arith.constant 0 : i32
    %c0_i32_0 = arith.constant 0 : i32
    %c0_i32_1 = arith.constant 0 : i32
    return %c0_i32, %c0_i32_0 : i32, i32
  }
  func.func @transform_3(%arg0: i32) -> (i32, i32) {
    %c0_i32 = arith.constant 0 : i32
    %c0_i32_0 = arith.constant 0 : i32
    %c0_i32_1 = arith.constant 0 : i32
    return %c0_i32, %c0_i32_0 : i32, i32
  }
  func.func @transform_4(%arg0: i32) -> (i32, i32) {
    %c0_i32 = arith.constant 0 : i32
    %c0_i32_0 = arith.constant 0 : i32
    %c0_i32_1 = arith.constant 0 : i32
    return %c0_i32, %c0_i32_0 : i32, i32
  }
  func.func @transform_5(%arg0: i32) -> (i32, i32) {
    %c0_i32 = arith.constant 0 : i32
    %c0_i32_0 = arith.constant 0 : i32
    %c0_i32_1 = arith.constant 0 : i32
    return %c0_i32, %c0_i32_0 : i32, i32
  }
  func.func @transform_6(%arg0: i32) -> (i32, i32) {
    %c0_i32 = arith.constant 0 : i32
    %c0_i32_0 = arith.constant 0 : i32
    return %arg0, %c0_i32 : i32, i32
  }
}

</mosaic_0001>

<bundles_post_ra>
// kernel: tpu_custom_call.1
= control target key start
LH: loop header
LB: loop body
LE: loop exit
PB: predicated region body
PF: predicated region fallthrough
CT: control target
= control target key end

     0   :  { %s1171_s0 = inlined_call_operand.hbm [shape: bf16[16,128], index: 0, kind: input, shape index: {}]   ;;  %s1172_s1 = inlined_call_operand.hbm [shape: bf16[16,128], index: 1, kind: input, shape index: {}]   ;;  %s1173_s2 = inlined_call_operand.hbm [shape: bf16[128,128], index: 2, kind: input, shape index: {}]   ;;  %s1174_s3 = inlined_call_operand.vmem [shape: f32[1,128], index: 3, kind: input, shape index: {}]   ;;  %s1175_s4 = inlined_call_operand.vmem [shape: f32[1,128], index: 4, kind: input, shape index: {}]   ;;  %s1176_s5 = inlined_call_operand.vmem [shape: f32[1,128], index: 5, kind: input, shape index: {}]   ;;  %s1177_s6 = inlined_call_operand.hbm [shape: bf16[16,128], index: 6, kind: output, shape index: {}]  }
   0x1   :  { %1183 = sst [smem:[#allocation15_spill]] %s1173_s2 }
   0x2   :  { %11 = vsyncpa [#allocation3], 0 }
   0x3   :  { %13 = vsyncpa [#allocation3 + $0x1], 0 }
   0x4   :  { %14 = vsyncpa [#allocation6], 0 }
   0x5   :  { %16 = vsyncpa [#allocation6 + $0x1], 0 }
   0x6   :  { %17 = vsyncpa [#allocation4], 0 }
   0x7   :  { %19 = vsyncpa [#allocation4 + $0x1], 0  ;;  %s923_s21 = smov 0   ;;  %s925_s22 = smov 0  }
   0x8   :  { %s927_s23 = smov 0   ;;  %s929_s24 = smov 0  }
   0x9 LB: > { %1184 = sst [smem:[#allocation13_spill]] %s874_s23  ;;  %s944_s25 = sadd.s32 4294967295, %s878_s24   ;;  %s878_s24 = sphi %s929_s24, %s1206_s24   ;;  %s874_s23 = sphi %s927_s23, %s1205_s23   ;;  %s870_s22 = sphi %s925_s22, %s1204_s22   ;;  %s866_s21 = sphi %s923_s21, %s1203_s21  }
   0xa   : > { %s583_s26 = sadd.s32 4294967294, %s878_s24   ;;  %p45_p0 = scmp.ne.s32.totalorder %s870_s22, %s866_s21 }
   0xb   : > { %p1178_p1 = scmp.eq.s32.totalorder %s944_s25, 0  ;;  %p185_p3 = scmp.eq.s32.totalorder %s583_s26, 1 }
   0xc   : > { %p584_p5 = scmp.ge.s32.totalorder %s878_s24, 1  ;;  %p192_p7 = scmp.lt.s32.totalorder %s878_s24, 3 }
   0xd   : > { %p953_p4 = por %p1178_p1, %p45_p0  ;;  %p958_p6 = por %p185_p3, %p45_p0 }
   0xe   : > { %p963_p8 = pnand %p584_p5, %p192_p7  ;;  %s880_s30 = smov [#allocation7]  }
   0xf   : > { %s1185_s27 = scalar_select %p953_p4, 1, 0 }
  0x10   : > { %s1186_s28 = scalar_select %p958_p6, 1, 0 }
  0x11   : > { %s1187_s29 = scalar_select %p963_p8, 1, 0 }
  0x12   : > { %s204_s7 = sshll.u32 %s880_s30, 4  ;;  %p650_p9 = pneg %p963_p8  ;;  %s967_s7 = int_to_ptr.vmem [resolvable:$true] %s204_s7 }
  0x13   : > { %s979_s9 = sadd.s32 1, %s878_s24   ;;  %s32_s10 = sadd.s32 1, %s874_s23 }
  0x14   : > { %p974_p11 = pnand %p650_p9, %p1178_p1  ;;  %s29_s11 = ssub.s32 %s878_s24, %s979_s9 }
  0x15   : > { %s1189_s2 = sld [smem:[#allocation15_spill]] }
  0x16   : > { %p718_p13 = pneg %p974_p11 }
  0x1b   : > { %s716_s14 = scalar_lea.hbm %s1189_s2, 1024 }
  0x1c   : > { %p717_p12 = scmp.ne.s32.totalorder %s1189_s2, %s716_s14  ;;  %p723_p5 = scmp.lt.u32.totalorder %s716_s14, %s1189_s2 }
  0x1e   : > { %p719_p0 = pnand %p718_p13, %p717_p12 }
  0x20   : > { %p720_p3 = pneg %p719_p0 }
  0x22   : > { %p725_p7 = pnand %p723_p5, %p720_p3 }
  0x24   : > { %728 = shalt.err (!%p725_p7)
}
  0x25   : > { %s729_s19 = scalar_lea.vmem %s967_s7, 1024  ;;  %p737_p2 = scmp.lt.s32.totalorder %s967_s7, %s967_s7 }
  0x26   : > { %p730_p9 = scmp.ne.s32.totalorder %s967_s7, %s729_s19  ;;  %p738_p6 = scmp.lt.s32.totalorder %s729_s19, %s729_s19 }
  0x28   : > { %p732_p10 = pnand %p730_p9, %p718_p13  ;;  %p739_p4 = por %p738_p6, %p737_p2 }
  0x2a   : > { %p733_p1 = pneg %p732_p10 }
  0x2c   : > { %p740_p8 = pnand %p739_p4, %p733_p1 }
  0x2e   : > { %743 = shalt.err (!%p740_p8)
}
  0x2f   : > { %s881_s20 = smov 64   ;;  %s882_s26 = smov 4  }
  0x30   : > { %653 = dma.hbm_to_vmem [thread:$0]  (!%p974_p11), %s1189_s2, 1024, %s967_s7, [#allocation6], %s881_s20, %s881_s20, %s882_s26  }
  0x31   : > { %p30_p2 = scmp.eq.s32.totalorder %s29_s11, 0  ;;  %p39_p1 = scmp.ne.s32.totalorder %s874_s23, %s870_s22 }
  0x32   : > { %p40_p4 = scmp.eq.s32.totalorder %s878_s24, 0  ;;  %p666_p6 = scmp.lt.s32.totalorder %s878_s24, 2 }
  0x33   : > { %s1010_s13 = scalar_select %p30_p2, %s874_s23, %s32_s10  }
  0x34   : > { %p41_p8 = por %p40_p4, %p39_p1  ;;  %p1191_p10 = scmp.eq.s32.totalorder %s944_s25, 1 }
  0x35   : > { %1190 = sst [smem:[#allocation14_spill]] %s1010_s13  ;;  %s227_s15 = sand.u32 1, %s874_s23  }
  0x36   : > { %p1014_p12 = por %p1191_p10, %p39_p1  ;;  %s588_s16 = sshll.u32 %s878_s24, 6 }
  0x37   : > { %s1020_s17 = sshll.u32 %s227_s15, 2  ;;  %s1025_s7 = scalar_lea.hbm %s1171_s0, %s588_s16 }
  0x38   : > { %s1192_s14 = scalar_select %p1014_p12, 1, 0 }
  0x39   : > { %s231_s10 = scalar_lea.vmem [#allocation2], %s1020_s17  ;;  %p1028_p11 = pnand %p666_p6, %p41_p8 }
  0x3a   : > { %s238_s11 = sshll.u32 %s231_s10, 4  ;;  %s1037_s30 = scalar_lea.hbm %s1172_s1, %s588_s16  ;;  %s1032_s11 = int_to_ptr.vmem [resolvable:$true] %s238_s11 }
  0x3b   : > { %s228_s12 = scalar_lea.sflag [#allocation3], %s227_s15  ;;  %s744_s8 = scalar_lea.hbm %s1025_s7, 64 }
  0x3c   : > { %p745_p13 = scmp.ne.s32.totalorder %s1025_s7, %s744_s8  ;;  %p746_p0 = pneg %p1028_p11 }
  0x3d   : > { %s749_s2 = scalar_lea.hbm %s1171_s0, 128  ;;  %p750_p7 = scmp.lt.u32.totalorder %s1025_s7, %s1171_s0 }
  0x3e   : > { %p747_p3 = pnand %p746_p0, %p745_p13  ;;  %p751_p9 = scmp.lt.u32.totalorder %s749_s2, %s744_s8 }
  0x3f   : > { %p753_p1 = scmp.lt.u32.totalorder %s744_s8, %s1025_s7 }
  0x40   : > { %p748_p5 = pneg %p747_p3  ;;  %p752_p2 = por %p751_p9, %p750_p7 }
  0x42   : > { %p754_p4 = por %p753_p1, %p752_p2 }
  0x44   : > { %p755_p6 = pnand %p754_p4, %p748_p5 }
  0x46   : > { %758 = shalt.err (!%p755_p6)
}
  0x47   : > { %s759_s15 = scalar_lea.vmem %s1032_s11, 64  ;;  %s883_s16 = smov [#allocation2]  }
  0x48   : > { %p760_p8 = scmp.ne.s32.totalorder %s1032_s11, %s759_s15  ;;  %s764_s20 = sshll.u32 %s883_s16, 4  ;;  %s765_s20 = int_to_ptr.vmem [resolvable:$false] %s764_s20 }
  0x49   : > { %s766_s23 = scalar_lea.vmem %s765_s20, 128  ;;  %p767_p3 = scmp.lt.s32.totalorder %s1032_s11, %s765_s20 }
  0x4a   : > { %p762_p10 = pnand %p760_p8, %p746_p0  ;;  %p768_p7 = scmp.lt.s32.totalorder %s766_s23, %s759_s15 }
  0x4c   : > { %p763_p13 = pneg %p762_p10  ;;  %p769_p9 = por %p768_p7, %p767_p3 }
  0x4e   : > { %p770_p2 = pnand %p769_p9, %p763_p13 }
  0x50   : > { %773 = shalt.err (!%p770_p2)
}
  0x51   : > { %657 = dma.hbm_to_vmem [thread:$0]  (!%p1028_p11), %s1025_s7, 64, %s1032_s11, %s228_s12  }
  0x52   : > { %s245_s2 = sand.u32 1, %s878_s24   ;;  %s249_s13 = scalar_lea.vmem [#allocation5], %s1020_s17 }
  0x53   : > { %s256_s26 = sshll.u32 %s249_s13, 4  ;;  %s246_s8 = scalar_lea.sflag [#allocation6], %s245_s2  ;;  %s257_s26 = int_to_ptr.vmem [resolvable:$true] %s256_s26 }
  0x54   : > { %s774_s18 = scalar_lea.hbm %s1037_s30, 64  ;;  %s779_s16 = scalar_lea.hbm %s1172_s1, 128 }
  0x55   : > { %p775_p5 = scmp.ne.s32.totalorder %s1037_s30, %s774_s18  ;;  %p780_p6 = scmp.lt.u32.totalorder %s1037_s30, %s1172_s1 }
  0x56   : > { %p781_p8 = scmp.lt.u32.totalorder %s779_s16, %s774_s18  ;;  %p783_p13 = scmp.lt.u32.totalorder %s774_s18, %s1037_s30 }
  0x57   : > { %p777_p1 = pnand %p775_p5, %p746_p0 }
  0x58   : > { %p782_p10 = por %p781_p8, %p780_p6 }
  0x59   : > { %p778_p4 = pneg %p777_p1 }
  0x5a   : > { %p784_p3 = por %p783_p13, %p782_p10 }
  0x5c   : > { %p785_p7 = pnand %p784_p3, %p778_p4 }
  0x5e   : > { %788 = shalt.err (!%p785_p7)
}
  0x5f   : > { %s789_s17 = scalar_lea.vmem %s257_s26, 64  ;;  %s884_s7 = smov [#allocation5]  }
  0x60   : > { %p790_p9 = scmp.ne.s32.totalorder %s257_s26, %s789_s17  ;;  %s794_s11 = sshll.u32 %s884_s7, 4  ;;  %s795_s11 = int_to_ptr.vmem [resolvable:$false] %s794_s11 }
  0x61   : > { %s796_s12 = scalar_lea.vmem %s795_s11, 128  ;;  %p797_p1 = scmp.lt.s32.totalorder %s257_s26, %s795_s11 }
  0x62   : > { %p792_p2 = pnand %p790_p9, %p746_p0  ;;  %p798_p12 = scmp.lt.s32.totalorder %s796_s12, %s789_s17 }
  0x64   : > { %p793_p5 = pneg %p792_p2  ;;  %p799_p6 = por %p798_p12, %p797_p1 }
  0x66   : > { %p800_p8 = pnand %p799_p6, %p793_p5 }
  0x68   : > { %803 = shalt.err (!%p800_p8)
}
  0x69   : > { %660 = dma.hbm_to_vmem [thread:$0]  (!%p1028_p11), %s1037_s30, 64, %s257_s26, %s246_s8  }
  0x6a   : > { %p1194_p4 = scmp.ne.s32.totalorder %s1187_s29, 0 }
  0x6b   : > { %s1088_s2 = sand.u32 (!%p1194_p4), 1, %s870_s22   ;;  %p1195_p12 = scmp.ne.s32.totalorder (!%p1194_p4), %s1185_s27, 0 }
  0x6c   : > { %265 = sbr.rel (%p1194_p4) target bundleno = 699 (0x2bb), region = 44  ;;  %s1091_s13 = sshll.u32 (!%p1194_p4), %s1088_s2, 2 }
  0x6d   : > { %s268_s18 = scalar_lea.sflag (!%p1194_p4), [#allocation3], %s1088_s2  ;;  %s271_s10 = scalar_lea.vmem (!%p1194_p4), [#allocation2], %s1091_s13 }
  0x73   : > { %849 = dma.done.wait (%p1195_p12), %s268_s18, 64  }
  0x74   : > { %851 = vsyncadd (%p1195_p12), %s268_s18, 4294967232  ;;  %s276_s29 = sand.u32 1, %s944_s25   ;;  %s280_s30 = scalar_lea.vmem [#allocation5], %s1091_s13 }
  0x75   : > { %s277_s19 = scalar_lea.sflag [#allocation6], %s276_s29 }
  0x76   : > { %853 = dma.done.wait (%p1195_p12), %s277_s19, 64  }
  0x77   : > { %855 = vsyncadd (%p1195_p12), %s277_s19, 4294967232  ;;  %p1196_p11 = scmp.eq.s32.totalorder %s944_s25, 0 }
  0x79   : > { %857 = dma.done.wait (%p1196_p11), [#allocation6], 1024   ;;  %p1197_p0 = pmov %p1196_p11 }
  0x7a   : > { %v885_v0 = vmov 0.0   ;;  %vm886_vm0 = vmmov 0   ;;  %v706_v1 = vld [vmem:[#allocation7] sm:$0xff]   ;;  %v707_v2 = vld [vmem:[#allocation7 + $0x8] sm:$0xff]   ;;  %v708_v3 = vld [vmem:[#allocation7 + $0x10] sm:$0xff]   ;;  %v438_v19 = vlaneseq  ;;  %s608_s23 = sshll.u32 %s944_s25, 6 }
  0x7b   : > { %859 = vsyncadd (%p1197_p0), [#allocation6], 4294966272  ;;  %620 = vmatprep.subr.bf16.mxu0 %v885_v0  ;;  %636 = vmatprep.mubr.msk.bf16.mxu0 %vm886_vm0, %v885_v0  ;;  %v709_v4 = vld [vmem:[#allocation7 + $0x18] sm:$0xff]   ;;  %v710_v5 = vld [vmem:[#allocation7 + $0x20] sm:$0xff]   ;;  %s317_s17 = scalar_lea.vmem [#allocation8], %s1091_s13  ;;  %s1127_s18 = scalar_lea.hbm %s1177_s6, %s608_s23 }
  0x7c   : > { %621 = vmatpush3.bf16.msra.mxu0 %v706_v1  ;;  %v711_v6 = vld [vmem:[#allocation7 + $0x28] sm:$0xff]   ;;  %v712_v7 = vld [vmem:[#allocation7 + $0x30] sm:$0xff]   ;;  %v713_v8 = vld [vmem:[#allocation7 + $0x38] sm:$0xff]   ;;  %v439_v20 = vand.u32 127, %v438_v19  ;;  %s481_s7 = sshll.u32 %s317_s17, 4  ;;  %p1198_p13 = scmp.ne.s32.totalorder %s1192_s14, 0  ;;  %s1129_s7 = int_to_ptr.vmem [resolvable:$true] %s481_s7 }
  0x7d   : > { %622 = vmatprep.subr.bf16.mxu0 %v885_v0  ;;  %v319_v9 = vld [vmem:[%s271_s10] sm:$0xf]  ;;  %v431_v10 = vld [vmem:[%s280_s30] sm:$0xf]  ;;  %s468_s10 = scalar_lea.sflag [#allocation4], %s1088_s2  ;;  %s804_s29 = scalar_lea.vmem %s1129_s7, 64 }
  0x7e   : > { %v596_v11 = vld [vmem:[%s1174_s3] ss:$0 sm:$0xff]  ;;  %v432_v12 = vunpack.c.l.bf16 %v431_v10  ;;  %vm440_vm1 = vcmp.lt.s32.totalorder %v439_v20, 32  ;;  %p805_p10 = scmp.ne.s32.totalorder %s1129_s7, %s804_s29  ;;  %s887_s25 = smov [#allocation8]  }
  0x7f   : > { %v605_v30 = vld [vmem:[%s1175_s4] ss:$0 sm:$0xff]  ;;  %s808_s13 = sshll.u32 %s887_s25, 4  ;;  %s809_s13 = int_to_ptr.vmem [resolvable:$false] %s808_s13 }
  0x80   : > { %623 = vmatpush3.bf16.msra.mxu0 %v707_v2  ;;  %v606_v32 = vld [vmem:[%s1176_s5] ss:$0 sm:$0xff]  ;;  %p806_p3 = pnand %p805_p10, %p1198_p13  ;;  %s810_s19 = scalar_lea.vmem %s809_s13, 128 }
  0x81   : > { %624 = vmatprep.subr.bf16.mxu0 %v885_v0  ;;  %p811_p9 = scmp.lt.s32.totalorder %s1129_s7, %s809_s13  ;;  %p812_p2 = scmp.lt.s32.totalorder %s810_s19, %s804_s29 }
  0x82   : > { %p807_p7 = pneg %p806_p3 }
  0x83   : > { %p813_p5 = por %p812_p2, %p811_p9 }
  0x84   : > { %625 = vmatpush3.bf16.msra.mxu0 %v708_v3 }
  0x85   : > { %626 = vmatprep.subr.bf16.mxu0 %v885_v0  ;;  %p814_p1 = pnand %p813_p5, %p807_p7 }
  0x88   : > { %627 = vmatpush3.bf16.msra.mxu0 %v709_v4 }
  0x89   : > { %628 = vmatprep.subr.bf16.mxu0 %v885_v0 }
  0x8c   : > { %629 = vmatpush3.bf16.msra.mxu0 %v710_v5 }
  0x8d   : > { %630 = vmatprep.subr.bf16.mxu0 %v885_v0 }
  0x90   : > { %631 = vmatpush3.bf16.msra.mxu0 %v711_v6 }
  0x91   : > { %632 = vmatprep.subr.bf16.mxu0 %v885_v0 }
  0x94   : > { %633 = vmatpush3.bf16.msra.mxu0 %v712_v7 }
  0x95   : > { %634 = vmatprep.subr.bf16.mxu0 %v885_v0 }
  0x98   : > { %635 = vmatpush3.bf16.msra.mxu0 %v713_v8 }
  0x9b   : > { %637 = vmatmul.mubr.bf16.vlgmr.msra.gmra.mrb[0].mxu0 %v319_v9 }
 0x16e   : > { %v425_v13 = vpop.f32.mrb[0].mxu0 }
 0x16f   : > { %v426_v14 = vadd.f32 %v596_v11, %v425_v13  ;;  %v638_v15 = vpop.f32.mrb[1].mxu0 }
 0x170   : > { %v428_v16 = vpop.f32.mrb[2].mxu0 }
 0x171   : > { %v639_v17 = vpop.f32.mrb[3].mxu0  ;;  %v433_v18 = vadd.f32 %v432_v12, %v426_v14 }
 0x173   : > { %434 = vadd.xlane.f32.xlu0 %v433_v18 }
 0x200   : > { %v435_v21 = vpop.xlane.xlu0 %434 }
 0x201   : > { %v436_v22 = vmul.f32 0.03125, %v435_v21 }
 0x203   : > { %v437_v23 = vsub.f32 %v433_v18, %v436_v22 }
 0x205   : > { %v441_v24 = vsel %vm440_vm1, %v437_v23, 0.0 }
 0x206   : > { %v442_v25 = vmul.f32 %v441_v24, %v441_v24 }
 0x208   : > { %443 = vadd.xlane.f32.xlu0 %v442_v25 }
 0x295   : > { %v444_v26 = vpop.xlane.xlu0 %443 }
 0x296   : > { %v445_v27 = vmul.f32 0.03125, %v444_v26 }
 0x298   : > { %v446_v28 = vadd.f32 1e-12, %v445_v27 }
 0x29a   : > { %714 = vrsqrt.f32 %v446_v28 }
 0x2a4   : > { %v715_v29 = vpop.eup %714 }
 0x2a5   : > { %v448_v31 = vmul.f32 %v715_v29, %v441_v24 }
 0x2a7   : > { %v456_v33 = vmul.f32 %v605_v30, %v448_v31 }
 0x2a9   : > { %v464_v34 = vadd.f32 %v606_v32, %v456_v33 }
 0x2ab   : > { %v465_v35 = vpack.c.bf16 %v464_v34, %v464_v34 }
 0x2ad   : > { %466 = vst [vmem:[%s317_s17] sm:$0xf] %v465_v35 }
 0x2ae   : > { %817 = shalt.err (!%p814_p1)
}
 0x2af   : > { %s818_s2 = scalar_lea.hbm %s1127_s18, 64  ;;  %s822_s26 = scalar_lea.hbm %s1177_s6, 128 }
 0x2b0   : > { %p819_p6 = scmp.ne.s32.totalorder %s1127_s18, %s818_s2  ;;  %p823_p12 = scmp.lt.u32.totalorder %s1127_s18, %s1177_s6 }
 0x2b1   : > { %p824_p11 = scmp.lt.u32.totalorder %s822_s26, %s818_s2  ;;  %p826_p10 = scmp.lt.u32.totalorder %s818_s2, %s1127_s18 }
 0x2b2   : > { %p820_p8 = pnand %p819_p6, %p1198_p13 }
 0x2b3   : > { %p825_p0 = por %p824_p11, %p823_p12 }
 0x2b4   : > { %p821_p4 = pneg %p820_p8 }
 0x2b5   : > { %p827_p3 = por %p826_p10, %p825_p0 }
 0x2b7   : > { %p828_p7 = pnand %p827_p3, %p821_p4 }
 0x2b9   : > { %831 = shalt.err (!%p828_p7)
}
 0x2ba   : > { %648 = dma.vmem_to_hbm [thread:$0]  (%p1198_p13), %s1129_s7, 64, %s1127_s18, %s468_s10  }
 0x2bb PF: > { %s493_s16 = sand.u32 1, %s866_s21   ;;  %p1199_p9 = scmp.ne.s32.totalorder %s1186_s28, 0 }
 0x2bc   : > { %p1200_p2 = scmp.ge.s32.totalorder %s878_s24, 2  ;;  %s494_s20 = scalar_lea.sflag [#allocation4], %s493_s16 }
 0x2be   : > { %p662_p5 = pnand %p1200_p2, %p1199_p9 }
 0x2c0   : > { %861 = dma.done.wait (!%p662_p5), %s494_s20, 64  }
 0x2c1   : > { %863 = vsyncadd (!%p662_p5), %s494_s20, 4294967232  ;;  %s1201_s23 = sld [smem:[#allocation13_spill]]  ;;  %s1202_s17 = sld [smem:[#allocation14_spill]] }
 0x2c2   : > { %p22_p1 = scmp.ge.s32.totalorder %s979_s9, 4   ;;  %s1203_s21 = smov %s870_s22 }
 0x2c3   : > { %s1206_s24 = smov %s979_s9 }
 0x2c4   :  { %24 = sbr.rel (!%p22_p1) target bundleno = 9 (0x9), region = 106 }
 0x2c7   : > { %s1204_s22 = smov %s1201_s23  ;;  %s1205_s23 = smov %s1202_s17 }
 0x2cb   :  { %499 = vsyncpa [#allocation3], 1 }
 0x2cc   :  { %501 = vsyncpa [#allocation3 + $0x1], 1 }
 0x2cd   :  { %502 = vsyncpa [#allocation6], 1 }
 0x2ce   :  { %504 = vsyncpa [#allocation6 + $0x1], 1 }
 0x2cf   :  { %505 = vsyncpa [#allocation4], 1 }
 0x2d0   :  { %507 = vsyncpa [#allocation4 + $0x1], 1 }

// kernel: tpu_custom_call.1
= control target key start
LH: loop header
LB: loop body
LE: loop exit
PB: predicated region body
PF: predicated region fallthrough
CT: control target
= control target key end

     0   :  { %s1171_s0 = inlined_call_operand.hbm [shape: bf16[16,128], index: 0, kind: input, shape index: {}]   ;;  %s1172_s1 = inlined_call_operand.hbm [shape: bf16[16,128], index: 1, kind: input, shape index: {}]   ;;  %s1173_s2 = inlined_call_operand.hbm [shape: bf16[128,128], index: 2, kind: input, shape index: {}]   ;;  %s1174_s3 = inlined_call_operand.vmem [shape: f32[1,128], index: 3, kind: input, shape index: {}]   ;;  %s1175_s4 = inlined_call_operand.vmem [shape: f32[1,128], index: 4, kind: input, shape index: {}]   ;;  %s1176_s5 = inlined_call_operand.vmem [shape: f32[1,128], index: 5, kind: input, shape index: {}]   ;;  %s1177_s6 = inlined_call_operand.hbm [shape: bf16[16,128], index: 6, kind: output, shape index: {}]  }
   0x1   :  { %1183 = sst [smem:[#allocation15_spill]] %s1173_s2 }
   0x2   :  { %11 = vsyncpa [#allocation3], 0 }
   0x3   :  { %13 = vsyncpa [#allocation3 + $0x1], 0 }
   0x4   :  { %14 = vsyncpa [#allocation6], 0 }
   0x5   :  { %16 = vsyncpa [#allocation6 + $0x1], 0 }
   0x6   :  { %17 = vsyncpa [#allocation4], 0 }
   0x7   :  { %19 = vsyncpa [#allocation4 + $0x1], 0  ;;  %s923_s21 = smov 0   ;;  %s925_s22 = smov 0  }
   0x8   :  { %s927_s23 = smov 0   ;;  %s929_s24 = smov 0  }
   0x9 LB: > { %1184 = sst [smem:[#allocation13_spill]] %s874_s23  ;;  %s944_s25 = sadd.s32 4294967295, %s878_s24   ;;  %s878_s24 = sphi %s929_s24, %s1206_s24   ;;  %s874_s23 = sphi %s927_s23, %s1205_s23   ;;  %s870_s22 = sphi %s925_s22, %s1204_s22   ;;  %s866_s21 = sphi %s923_s21, %s1203_s21  }
   0xa   : > { %s583_s26 = sadd.s32 4294967294, %s878_s24   ;;  %p45_p0 = scmp.ne.s32.totalorder %s870_s22, %s866_s21 }
   0xb   : > { %p1178_p1 = scmp.eq.s32.totalorder %s944_s25, 0  ;;  %p185_p3 = scmp.eq.s32.totalorder %s583_s26, 1 }
   0xc   : > { %p584_p5 = scmp.ge.s32.totalorder %s878_s24, 1  ;;  %p192_p7 = scmp.lt.s32.totalorder %s878_s24, 3 }
   0xd   : > { %p953_p4 = por %p1178_p1, %p45_p0  ;;  %p958_p6 = por %p185_p3, %p45_p0 }
   0xe   : > { %p963_p8 = pnand %p584_p5, %p192_p7  ;;  %s880_s30 = smov [#allocation7]  }
   0xf   : > { %s1185_s27 = scalar_select %p953_p4, 1, 0 }
  0x10   : > { %s1186_s28 = scalar_select %p958_p6, 1, 0 }
  0x11   : > { %s1187_s29 = scalar_select %p963_p8, 1, 0 }
  0x12   : > { %s204_s7 = sshll.u32 %s880_s30, 4  ;;  %p650_p9 = pneg %p963_p8  ;;  %s967_s7 = int_to_ptr.vmem [resolvable:$true] %s204_s7 }
  0x13   : > { %s979_s9 = sadd.s32 1, %s878_s24   ;;  %s32_s10 = sadd.s32 1, %s874_s23 }
  0x14   : > { %p974_p11 = pnand %p650_p9, %p1178_p1  ;;  %s29_s11 = ssub.s32 %s878_s24, %s979_s9 }
  0x15   : > { %s1189_s2 = sld [smem:[#allocation15_spill]] }
  0x16   : > { %p718_p13 = pneg %p974_p11 }
  0x1b   : > { %s716_s14 = scalar_lea.hbm %s1189_s2, 1024 }
  0x1c   : > { %p717_p12 = scmp.ne.s32.totalorder %s1189_s2, %s716_s14  ;;  %p723_p5 = scmp.lt.u32.totalorder %s716_s14, %s1189_s2 }
  0x1e   : > { %p719_p0 = pnand %p718_p13, %p717_p12 }
  0x20   : > { %p720_p3 = pneg %p719_p0 }
  0x22   : > { %p725_p7 = pnand %p723_p5, %p720_p3 }
  0x24   : > { %728 = shalt.err (!%p725_p7)
}
  0x25   : > { %s729_s19 = scalar_lea.vmem %s967_s7, 1024  ;;  %p737_p2 = scmp.lt.s32.totalorder %s967_s7, %s967_s7 }
  0x26   : > { %p730_p9 = scmp.ne.s32.totalorder %s967_s7, %s729_s19  ;;  %p738_p6 = scmp.lt.s32.totalorder %s729_s19, %s729_s19 }
  0x28   : > { %p732_p10 = pnand %p730_p9, %p718_p13  ;;  %p739_p4 = por %p738_p6, %p737_p2 }
  0x2a   : > { %p733_p1 = pneg %p732_p10 }
  0x2c   : > { %p740_p8 = pnand %p739_p4, %p733_p1 }
  0x2e   : > { %743 = shalt.err (!%p740_p8)
}
  0x2f   : > { %s881_s20 = smov 64   ;;  %s882_s26 = smov 4  }
  0x30   : > { %653 = dma.hbm_to_vmem [thread:$0]  (!%p974_p11), %s1189_s2, 1024, %s967_s7, [#allocation6], %s881_s20, %s881_s20, %s882_s26  }
  0x31   : > { %p30_p2 = scmp.eq.s32.totalorder %s29_s11, 0  ;;  %p39_p1 = scmp.ne.s32.totalorder %s874_s23, %s870_s22 }
  0x32   : > { %p40_p4 = scmp.eq.s32.totalorder %s878_s24, 0  ;;  %p666_p6 = scmp.lt.s32.totalorder %s878_s24, 2 }
  0x33   : > { %s1010_s13 = scalar_select %p30_p2, %s874_s23, %s32_s10  }
  0x34   : > { %p41_p8 = por %p40_p4, %p39_p1  ;;  %p1191_p10 = scmp.eq.s32.totalorder %s944_s25, 1 }
  0x35   : > { %1190 = sst [smem:[#allocation14_spill]] %s1010_s13  ;;  %s227_s15 = sand.u32 1, %s874_s23  }
  0x36   : > { %p1014_p12 = por %p1191_p10, %p39_p1  ;;  %s588_s16 = sshll.u32 %s878_s24, 6 }
  0x37   : > { %s1020_s17 = sshll.u32 %s227_s15, 2  ;;  %s1025_s7 = scalar_lea.hbm %s1171_s0, %s588_s16 }
  0x38   : > { %s1192_s14 = scalar_select %p1014_p12, 1, 0 }
  0x39   : > { %s231_s10 = scalar_lea.vmem [#allocation2], %s1020_s17  ;;  %p1028_p11 = pnand %p666_p6, %p41_p8 }
  0x3a   : > { %s238_s11 = sshll.u32 %s231_s10, 4  ;;  %s1037_s30 = scalar_lea.hbm %s1172_s1, %s588_s16  ;;  %s1032_s11 = int_to_ptr.vmem [resolvable:$true] %s238_s11 }
  0x3b   : > { %s228_s12 = scalar_lea.sflag [#allocation3], %s227_s15  ;;  %s744_s8 = scalar_lea.hbm %s1025_s7, 64 }
  0x3c   : > { %p745_p13 = scmp.ne.s32.totalorder %s1025_s7, %s744_s8  ;;  %p746_p0 = pneg %p1028_p11 }
  0x3d   : > { %s749_s2 = scalar_lea.hbm %s1171_s0, 128  ;;  %p750_p7 = scmp.lt.u32.totalorder %s1025_s7, %s1171_s0 }
  0x3e   : > { %p747_p3 = pnand %p746_p0, %p745_p13  ;;  %p751_p9 = scmp.lt.u32.totalorder %s749_s2, %s744_s8 }
  0x3f   : > { %p753_p1 = scmp.lt.u32.totalorder %s744_s8, %s1025_s7 }
  0x40   : > { %p748_p5 = pneg %p747_p3  ;;  %p752_p2 = por %p751_p9, %p750_p7 }
  0x42   : > { %p754_p4 = por %p753_p1, %p752_p2 }
  0x44   : > { %p755_p6 = pnand %p754_p4, %p748_p5 }
  0x46   : > { %758 = shalt.err (!%p755_p6)
}
  0x47   : > { %s759_s15 = scalar_lea.vmem %s1032_s11, 64  ;;  %s883_s16 = smov [#allocation2]  }
  0x48   : > { %p760_p8 = scmp.ne.s32.totalorder %s1032_s11, %s759_s15  ;;  %s764_s20 = sshll.u32 %s883_s16, 4  ;;  %s765_s20 = int_to_ptr.vmem [resolvable:$false] %s764_s20 }
  0x49   : > { %s766_s23 = scalar_lea.vmem %s765_s20, 128  ;;  %p767_p3 = scmp.lt.s32.totalorder %s1032_s11, %s765_s20 }
  0x4a   : > { %p762_p10 = pnand %p760_p8, %p746_p0  ;;  %p768_p7 = scmp.lt.s32.totalorder %s766_s23, %s759_s15 }
  0x4c   : > { %p763_p13 = pneg %p762_p10  ;;  %p769_p9 = por %p768_p7, %p767_p3 }
  0x4e   : > { %p770_p2 = pnand %p769_p9, %p763_p13 }
  0x50   : > { %773 = shalt.err (!%p770_p2)
}
  0x51   : > { %657 = dma.hbm_to_vmem [thread:$0]  (!%p1028_p11), %s1025_s7, 64, %s1032_s11, %s228_s12  }
  0x52   : > { %s245_s2 = sand.u32 1, %s878_s24   ;;  %s249_s13 = scalar_lea.vmem [#allocation5], %s1020_s17 }
  0x53   : > { %s256_s26 = sshll.u32 %s249_s13, 4  ;;  %s246_s8 = scalar_lea.sflag [#allocation6], %s245_s2  ;;  %s257_s26 = int_to_ptr.vmem [resolvable:$true] %s256_s26 }
  0x54   : > { %s774_s18 = scalar_lea.hbm %s1037_s30, 64  ;;  %s779_s16 = scalar_lea.hbm %s1172_s1, 128 }
  0x55   : > { %p775_p5 = scmp.ne.s32.totalorder %s1037_s30, %s774_s18  ;;  %p780_p6 = scmp.lt.u32.totalorder %s1037_s30, %s1172_s1 }
  0x56   : > { %p781_p8 = scmp.lt.u32.totalorder %s779_s16, %s774_s18  ;;  %p783_p13 = scmp.lt.u32.totalorder %s774_s18, %s1037_s30 }
  0x57   : > { %p777_p1 = pnand %p775_p5, %p746_p0 }
  0x58   : > { %p782_p10 = por %p781_p8, %p780_p6 }
  0x59   : > { %p778_p4 = pneg %p777_p1 }
  0x5a   : > { %p784_p3 = por %p783_p13, %p782_p10 }
  0x5c   : > { %p785_p7 = pnand %p784_p3, %p778_p4 }
  0x5e   : > { %788 = shalt.err (!%p785_p7)
}
  0x5f   : > { %s789_s17 = scalar_lea.vmem %s257_s26, 64  ;;  %s884_s7 = smov [#allocation5]  }
  0x60   : > { %p790_p9 = scmp.ne.s32.totalorder %s257_s26, %s789_s17  ;;  %s794_s11 = sshll.u32 %s884_s7, 4  ;;  %s795_s11 = int_to_ptr.vmem [resolvable:$false] %s794_s11 }
  0x61   : > { %s796_s12 = scalar_lea.vmem %s795_s11, 128  ;;  %p797_p1 = scmp.lt.s32.totalorder %s257_s26, %s795_s11 }
  0x62   : > { %p792_p2 = pnand %p790_p9, %p746_p0  ;;  %p798_p12 = scmp.lt.s32.totalorder %s796_s12, %s789_s17 }
  0x64   : > { %p793_p5 = pneg %p792_p2  ;;  %p799_p6 = por %p798_p12, %p797_p1 }
  0x66   : > { %p800_p8 = pnand %p799_p6, %p793_p5 }
  0x68   : > { %803 = shalt.err (!%p800_p8)
}
  0x69   : > { %660 = dma.hbm_to_vmem [thread:$0]  (!%p1028_p11), %s1037_s30, 64, %s257_s26, %s246_s8  }
  0x6a   : > { %p1194_p4 = scmp.ne.s32.totalorder %s1187_s29, 0 }
  0x6b   : > { %s1088_s2 = sand.u32 (!%p1194_p4), 1, %s870_s22   ;;  %p1195_p12 = scmp.ne.s32.totalorder (!%p1194_p4), %s1185_s27, 0 }
  0x6c   : > { %265 = sbr.rel (%p1194_p4) target bundleno = 699 (0x2bb), region = 44  ;;  %s1091_s13 = sshll.u32 (!%p1194_p4), %s1088_s2, 2 }
  0x6d   : > { %s268_s18 = scalar_lea.sflag (!%p1194_p4), [#allocation3], %s1088_s2  ;;  %s271_s10 = scalar_lea.vmem (!%p1194_p4), [#allocation2], %s1091_s13 }
  0x73   : > { %849 = dma.done.wait (%p1195_p12), %s268_s18, 64  }
  0x74   : > { %851 = vsyncadd (%p1195_p12), %s268_s18, 4294967232  ;;  %s276_s29 = sand.u32 1, %s944_s25   ;;  %s280_s30 = scalar_lea.vmem [#allocation5], %s1091_s13 }
  0x75   : > { %s277_s19 = scalar_lea.sflag [#allocation6], %s276_s29 }
  0x76   : > { %853 = dma.done.wait (%p1195_p12), %s277_s19, 64  }
  0x77   : > { %855 = vsyncadd (%p1195_p12), %s277_s19, 4294967232  ;;  %p1196_p11 = scmp.eq.s32.totalorder %s944_s25, 0 }
  0x79   : > { %857 = dma.done.wait (%p1196_p11), [#allocation6], 1024   ;;  %p1197_p0 = pmov %p1196_p11 }
  0x7a   : > { %v885_v0 = vmov 0.0   ;;  %vm886_vm0 = vmmov 0   ;;  %v706_v1 = vld [vmem:[#allocation7] sm:$0xff]   ;;  %v707_v2 = vld [vmem:[#allocation7 + $0x8] sm:$0xff]   ;;  %v708_v3 = vld [vmem:[#allocation7 + $0x10] sm:$0xff]   ;;  %v438_v19 = vlaneseq  ;;  %s608_s23 = sshll.u32 %s944_s25, 6 }
  0x7b   : > { %859 = vsyncadd (%p1197_p0), [#allocation6], 4294966272  ;;  %620 = vmatprep.subr.bf16.mxu0 %v885_v0  ;;  %636 = vmatprep.mubr.msk.bf16.mxu0 %vm886_vm0, %v885_v0  ;;  %v709_v4 = vld [vmem:[#allocation7 + $0x18] sm:$0xff]   ;;  %v710_v5 = vld [vmem:[#allocation7 + $0x20] sm:$0xff]   ;;  %s317_s17 = scalar_lea.vmem [#allocation8], %s1091_s13  ;;  %s1127_s18 = scalar_lea.hbm %s1177_s6, %s608_s23 }
  0x7c   : > { %621 = vmatpush3.bf16.msra.mxu0 %v706_v1  ;;  %v711_v6 = vld [vmem:[#allocation7 + $0x28] sm:$0xff]   ;;  %v712_v7 = vld [vmem:[#allocation7 + $0x30] sm:$0xff]   ;;  %v713_v8 = vld [vmem:[#allocation7 + $0x38] sm:$0xff]   ;;  %v439_v20 = vand.u32 127, %v438_v19  ;;  %s481_s7 = sshll.u32 %s317_s17, 4  ;;  %p1198_p13 = scmp.ne.s32.totalorder %s1192_s14, 0  ;;  %s1129_s7 = int_to_ptr.vmem [resolvable:$true] %s481_s7 }
  0x7d   : > { %622 = vmatprep.subr.bf16.mxu0 %v885_v0  ;;  %v319_v9 = vld [vmem:[%s271_s10] sm:$0xf]  ;;  %v431_v10 = vld [vmem:[%s280_s30] sm:$0xf]  ;;  %s468_s10 = scalar_lea.sflag [#allocation4], %s1088_s2  ;;  %s804_s29 = scalar_lea.vmem %s1129_s7, 64 }
  0x7e   : > { %v596_v11 = vld [vmem:[%s1174_s3] ss:$0 sm:$0xff]  ;;  %v432_v12 = vunpack.c.l.bf16 %v431_v10  ;;  %vm440_vm1 = vcmp.lt.s32.totalorder %v439_v20, 32  ;;  %p805_p10 = scmp.ne.s32.totalorder %s1129_s7, %s804_s29  ;;  %s887_s25 = smov [#allocation8]  }
  0x7f   : > { %v605_v30 = vld [vmem:[%s1175_s4] ss:$0 sm:$0xff]  ;;  %s808_s13 = sshll.u32 %s887_s25, 4  ;;  %s809_s13 = int_to_ptr.vmem [resolvable:$false] %s808_s13 }
  0x80   : > { %623 = vmatpush3.bf16.msra.mxu0 %v707_v2  ;;  %v606_v32 = vld [vmem:[%s1176_s5] ss:$0 sm:$0xff]  ;;  %p806_p3 = pnand %p805_p10, %p1198_p13  ;;  %s810_s19 = scalar_lea.vmem %s809_s13, 128 }
  0x81   : > { %624 = vmatprep.subr.bf16.mxu0 %v885_v0  ;;  %p811_p9 = scmp.lt.s32.totalorder %s1129_s7, %s809_s13  ;;  %p812_p2 = scmp.lt.s32.totalorder %s810_s19, %s804_s29 }
  0x82   : > { %p807_p7 = pneg %p806_p3 }
  0x83   : > { %p813_p5 = por %p812_p2, %p811_p9 }
  0x84   : > { %625 = vmatpush3.bf16.msra.mxu0 %v708_v3 }
  0x85   : > { %626 = vmatprep.subr.bf16.mxu0 %v885_v0  ;;  %p814_p1 = pnand %p813_p5, %p807_p7 }
  0x88   : > { %627 = vmatpush3.bf16.msra.mxu0 %v709_v4 }
  0x89   : > { %628 = vmatprep.subr.bf16.mxu0 %v885_v0 }
  0x8c   : > { %629 = vmatpush3.bf16.msra.mxu0 %v710_v5 }
  0x8d   : > { %630 = vmatprep.subr.bf16.mxu0 %v885_v0 }
  0x90   : > { %631 = vmatpush3.bf16.msra.mxu0 %v711_v6 }
  0x91   : > { %632 = vmatprep.subr.bf16.mxu0 %v885_v0 }
  0x94   : > { %633 = vmatpush3.bf16.msra.mxu0 %v712_v7 }
  0x95   : > { %634 = vmatprep.subr.bf16.mxu0 %v885_v0 }
  0x98   : > { %635 = vmatpush3.bf16.msra.mxu0 %v713_v8 }
  0x9b   : > { %637 = vmatmul.mubr.bf16.vlgmr.msra.gmra.mrb[0].mxu0 %v319_v9 }
 0x16e   : > { %v425_v13 = vpop.f32.mrb[0].mxu0 }
 0x16f   : > { %v426_v14 = vadd.f32 %v596_v11, %v425_v13  ;;  %v638_v15 = vpop.f32.mrb[1].mxu0 }
 0x170   : > { %v428_v16 = vpop.f32.mrb[2].mxu0 }
 0x171   : > { %v639_v17 = vpop.f32.mrb[3].mxu0  ;;  %v433_v18 = vadd.f32 %v432_v12, %v426_v14 }
 0x173   : > { %434 = vadd.xlane.f32.xlu0 %v433_v18 }
 0x200   : > { %v435_v21 = vpop.xlane.xlu0 %434 }
 0x201   : > { %v436_v22 = vmul.f32 0.03125, %v435_v21 }
 0x203   : > { %v437_v23 = vsub.f32 %v433_v18, %v436_v22 }
 0x205   : > { %v441_v24 = vsel %vm440_vm1, %v437_v23, 0.0 }
 0x206   : > { %v442_v25 = vmul.f32 %v441_v24, %v441_v24 }
 0x208   : > { %443 = vadd.xlane.f32.xlu0 %v442_v25 }
 0x295   : > { %v444_v26 = vpop.xlane.xlu0 %443 }
 0x296   : > { %v445_v27 = vmul.f32 0.03125, %v444_v26 }
 0x298   : > { %v446_v28 = vadd.f32 1e-12, %v445_v27 }
 0x29a   : > { %714 = vrsqrt.f32 %v446_v28 }
 0x2a4   : > { %v715_v29 = vpop.eup %714 }
 0x2a5   : > { %v448_v31 = vmul.f32 %v715_v29, %v441_v24 }
 0x2a7   : > { %v456_v33 = vmul.f32 %v605_v30, %v448_v31 }
 0x2a9   : > { %v464_v34 = vadd.f32 %v606_v32, %v456_v33 }
 0x2ab   : > { %v465_v35 = vpack.c.bf16 %v464_v34, %v464_v34 }
 0x2ad   : > { %466 = vst [vmem:[%s317_s17] sm:$0xf] %v465_v35 }
 0x2ae   : > { %817 = shalt.err (!%p814_p1)
}
 0x2af   : > { %s818_s2 = scalar_lea.hbm %s1127_s18, 64  ;;  %s822_s26 = scalar_lea.hbm %s1177_s6, 128 }
 0x2b0   : > { %p819_p6 = scmp.ne.s32.totalorder %s1127_s18, %s818_s2  ;;  %p823_p12 = scmp.lt.u32.totalorder %s1127_s18, %s1177_s6 }
 0x2b1   : > { %p824_p11 = scmp.lt.u32.totalorder %s822_s26, %s818_s2  ;;  %p826_p10 = scmp.lt.u32.totalorder %s818_s2, %s1127_s18 }
 0x2b2   : > { %p820_p8 = pnand %p819_p6, %p1198_p13 }
 0x2b3   : > { %p825_p0 = por %p824_p11, %p823_p12 }
 0x2b4   : > { %p821_p4 = pneg %p820_p8 }
 0x2b5   : > { %p827_p3 = por %p826_p10, %p825_p0 }
 0x2b7   : > { %p828_p7 = pnand %p827_p3, %p821_p4 }
 0x2b9   : > { %831 = shalt.err (!%p828_p7)
}
 0x2ba   : > { %648 = dma.vmem_to_hbm [thread:$0]  (%p1198_p13), %s1129_s7, 64, %s1127_s18, %s468_s10  }
 0x2bb PF: > { %s493_s16 = sand.u32 1, %s866_s21   ;;  %p1199_p9 = scmp.ne.s32.totalorder %s1186_s28, 0 }
 0x2bc   : > { %p1200_p2 = scmp.ge.s32.totalorder %s878_s24, 2  ;;  %s494_s20 = scalar_lea.sflag [#allocation4], %s493_s16 }
 0x2be   : > { %p662_p5 = pnand %p1200_p2, %p1199_p9 }
 0x2c0   : > { %861 = dma.done.wait (!%p662_p5), %s494_s20, 64  }
 0x2c1   : > { %863 = vsyncadd (!%p662_p5), %s494_s20, 4294967232  ;;  %s1201_s23 = sld [smem:[#allocation13_spill]]  ;;  %s1202_s17 = sld [smem:[#allocation14_spill]] }
 0x2c2   : > { %p22_p1 = scmp.ge.s32.totalorder %s979_s9, 4   ;;  %s1203_s21 = smov %s870_s22 }
 0x2c3   : > { %s1206_s24 = smov %s979_s9 }
 0x2c4   :  { %24 = sbr.rel (!%p22_p1) target bundleno = 9 (0x9), region = 106 }
 0x2c7   : > { %s1204_s22 = smov %s1201_s23  ;;  %s1205_s23 = smov %s1202_s17 }
 0x2cb   :  { %499 = vsyncpa [#allocation3], 1 }
 0x2cc   :  { %501 = vsyncpa [#allocation3 + $0x1], 1 }
 0x2cd   :  { %502 = vsyncpa [#allocation6], 1 }
 0x2ce   :  { %504 = vsyncpa [#allocation6 + $0x1], 1 }
 0x2cf   :  { %505 = vsyncpa [#allocation4], 1 }
 0x2d0   :  { %507 = vsyncpa [#allocation4 + $0x1], 1 }

</bundles_post_ra>
